<compile_context>
chip_gen: v7x
topology: tpu7x:2x2x1
jax: 0.10.0
libtpu: 0.0.40
codegen_flags: <defaults>
</compile_context>

<pallas_src>
import functools

import jax
import jax.numpy as jnp
from jax.experimental import pallas as pl
from jax.experimental.pallas import tpu as pltpu


def _modulate(pt, ce, *, alpha, gamma):
    """alpha * (1 - pt)**gamma * ce with cheap paths for integer gamma."""
    g = float(gamma)
    if g == 0.0:
        return alpha * ce
    om = 1.0 - pt
    if g.is_integer() and 0.0 < g <= 8.0:
        mod = om
        for _ in range(int(g) - 1):
            mod = mod * om                      # pure VALU, no pow -> log+exp
    else:
        # Fractional gamma: clamp guards pow() against pt > 1 from rounding.
        mod = jnp.power(jnp.maximum(om, 0.0), g)
    return (alpha * mod) * ce


def _focal_loss_nchw_kernel(x_ref, t_ref, o_ref, *, alpha, gamma, ignore_index,
                            hw_s, lanes_per_block):
    # x_ref: (1, C, S, T) logits; t_ref: (1, 1, S, T) int32; o_ref: (1, 1, S, 1).
    j = pl.program_id(1)
    x = x_ref[0].astype(jnp.float32)            # (C, S, T)
    t = t_ref[0, 0]                             # (S, T) int32
    num_classes = x.shape[0]

    # Numerically-stable log-sum-exp over the class axis (untiled leading dim
    # -> cross-vreg VALU max/add, no XLU reduce needed).
    m = jnp.max(x, axis=0)                      # (S, T)
    e = jnp.exp(x - m)                          # (C, S, T)
    sum_e = jnp.sum(e, axis=0)                  # (S, T)

    # Target-class logit / exp via static per-class selects (no gather, no
    # iota along the leading dim; class count is a small static int).
    x_t = jnp.zeros_like(m)
    e_t = jnp.zeros_like(m)
    for c in range(num_classes):
        hit = t == c
        x_t = jnp.where(hit, x[c], x_t)
        e_t = jnp.where(hit, e[c], e_t)

    ce = jnp.log(sum_e) + (m - x_t)             # -log softmax[target], (S, T)
    # pt == exp(-ce); reuse the exp() already computed instead of a second exp.
    # (On v7x, `e_t * pl.reciprocal(sum_e, approx=True)` moves this to the EUP.)
    pt = e_t / sum_e
    fl = _modulate(pt, ce, alpha=alpha, gamma=gamma)

    # Mask ignore_index pixels AND the ragged lanes of the last grid block
    # (mandatory now that we accumulate partial sums in-kernel).
    lane = jax.lax.broadcasted_iota(jnp.int32, t.shape, 1) + j * lanes_per_block
    valid = (t != ignore_index) & (lane < hw_s)
    fl = jnp.where(valid, fl, 0.0)

    # Per-block partial sums: cross-lane reduce is free XLU filler; the store
    # is S*4 bytes per grid step instead of a per-pixel map.
    o_ref[0, 0] = jnp.sum(fl, axis=1, keepdims=True)


def _focal_loss_rows_kernel(x_ref, t_ref, o_ref, *, alpha, gamma, ignore_index,
                            n_rows, rows_per_block):
    # (N, C) classification path: rows (items) on sublanes, classes on lanes.
    i = pl.program_id(0)
    x = x_ref[...].astype(jnp.float32)          # (TN, C)
    t = t_ref[...]                              # (TN, 1) int32

    m = jnp.max(x, axis=1, keepdims=True)       # (TN, 1)
    e = jnp.exp(x - m)
    sum_e = jnp.sum(e, axis=1, keepdims=True)

    cls = jax.lax.broadcasted_iota(jnp.int32, x.shape, 1)   # lane-dim iota
    onehot = cls == t
    x_t = jnp.sum(jnp.where(onehot, x, 0.0), axis=1, keepdims=True)
    e_t = jnp.sum(jnp.where(onehot, e, 0.0), axis=1, keepdims=True)

    ce = jnp.log(sum_e) + (m - x_t)
    pt = e_t / sum_e
    fl = _modulate(pt, ce, alpha=alpha, gamma=gamma)

    row = jax.lax.broadcasted_iota(jnp.int32, t.shape, 0) + i * rows_per_block
    valid = (t != ignore_index) & (row < n_rows)
    # Per-row output is only N*4 bytes total (batch-sized) -> reduce in wrapper.
    o_ref[...] = jnp.where(valid, fl, 0.0).astype(o_ref.dtype)


def _focal_sum_nchw(inputs, targets, *, alpha, gamma, ignore_index, tile_bytes):
    n, c, h, w = inputs.shape
    hw = h * w

    # Sublane+lane-dense view: (N, C, H*W) -> (N, C, S, HW/S). Free row-major
    # reshape of NCHW; S=8 whenever HW allows so epilogue vregs are full.
    s = next(d for d in (8, 4, 2, 1) if hw % d == 0)
    hw_s = hw // s
    x4 = inputs.reshape(n, c, s, hw_s)          # keep original dtype (bf16 ok)
    # TODO(synk): pass narrow (uint8/int16) targets straight through when the
    # caller already stores them narrow; int32 keeps this script simple.
    t4 = targets.reshape(n, 1, s, hw_s).astype(jnp.int32)

    itemsize = jnp.dtype(inputs.dtype).itemsize
    # ~tile_bytes of logits per block (roofline plateaus by ~4-16 MiB tiles);
    # capped so the double-buffered footprint fits v7x's 64 MiB/TC VMEM.
    tile_bytes = min(int(tile_bytes), 12 * 1024 * 1024)
    lanes = max(128, (tile_bytes // max(c * s * itemsize, 1)) // 128 * 128)
    t_lanes = hw_s if hw_s <= lanes else lanes  # full-dim or multiple of 128
    num_j = pl.cdiv(hw_s, t_lanes)              # ragged last block is masked

    # Explicit VMEM budget: double-buffered logits + targets + partial-sum out.
    x_tile = c * s * t_lanes * itemsize
    t_tile = s * t_lanes * 4
    o_tile = s * 4
    vmem_limit = min(max(2 * (x_tile + t_tile + o_tile) + (8 << 20), 16 << 20),
                     60 << 20)

    kernel = functools.partial(
        _focal_loss_nchw_kernel, alpha=float(alpha), gamma=float(gamma),
        ignore_index=int(ignore_index), hw_s=hw_s, lanes_per_block=t_lanes)

    cost = pl.CostEstimate(
        flops=int(10 * n * c * hw),
        transcendentals=int(n * hw * (c + 2)),
        bytes_accessed=int(x4.size * itemsize + t4.size * 4 + n * num_j * s * 4),
    )

    partial_sums = pl.pallas_call(
        kernel,
        out_shape=jax.ShapeDtypeStruct((n, num_j, s, 1), jnp.float32),
        grid_spec=pltpu.PrefetchScalarGridSpec(
            num_scalar_prefetch=0,
            grid=(n, num_j),
            in_specs=[
                pl.BlockSpec((1, c, s, t_lanes), lambda i, j: (i, 0, 0, j)),
                pl.BlockSpec((1, 1, s, t_lanes), lambda i, j: (i, 0, 0, j)),
            ],
            out_specs=pl.BlockSpec((1, 1, s, 1), lambda i, j: (i, j, 0, 0)),
        ),
        compiler_params=pltpu.CompilerParams(
            dimension_semantics=("parallel", "parallel"),
            vmem_limit_bytes=int(vmem_limit)),
        cost_estimate=cost,
    )(x4, t4)

    return jnp.sum(partial_sums)


def _focal_sum_nc(inputs, targets, *, alpha, gamma, ignore_index):
    n, c = inputs.shape
    itemsize = jnp.dtype(inputs.dtype).itemsize
    t2 = targets.reshape(n, 1).astype(jnp.int32)

    rows_cap = max(8, ((8 << 20) // max(c * itemsize, 1)) // 8 * 8)
    block_n = n if n <= rows_cap else rows_cap
    num_i = pl.cdiv(n, block_n)

    kernel = functools.partial(
        _focal_loss_rows_kernel, alpha=float(alpha), gamma=float(gamma),
        ignore_index=int(ignore_index), n_rows=n, rows_per_block=block_n)

    per_row = pl.pallas_call(
        kernel,
        out_shape=jax.ShapeDtypeStruct((n, 1), jnp.float32),
        grid_spec=pltpu.PrefetchScalarGridSpec(
            num_scalar_prefetch=0,
            grid=(num_i,),
            in_specs=[
                pl.BlockSpec((block_n, c), lambda i: (i, 0)),
                pl.BlockSpec((block_n, 1), lambda i: (i, 0)),
            ],
            out_specs=pl.BlockSpec((block_n, 1), lambda i: (i, 0)),
        ),
        compiler_params=pltpu.CompilerParams(
            dimension_semantics=("parallel",)),
    )(inputs, t2)

    return jnp.sum(per_row)


def focal_loss(inputs, targets, *, alpha=1.0, gamma=0.0, size_average=True,
               ignore_index=255, tile_bytes=6 * 1024 * 1024):
    """Pallas TPU FocalLoss.forward.

    inputs:  (N, C) or (N, C, H, W) logits (f32 or bf16 — kept in native dtype
             through the kernel, upcast per tile).
    targets: (N,)   or (N, H, W)    integer class indices (ignore_index allowed)
    Returns a scalar: mean over ALL elements (incl. ignored, which contribute 0,
    matching this module's `.mean()`) if size_average, else the sum.
    """
    if inputs.ndim == 2:
        total = _focal_sum_nc(inputs, targets, alpha=alpha, gamma=gamma,
                              ignore_index=ignore_index)
    elif inputs.ndim == 4:
        total = _focal_sum_nchw(inputs, targets, alpha=alpha, gamma=gamma,
                                ignore_index=ignore_index, tile_bytes=tile_bytes)
    else:
        raise ValueError(f"unsupported inputs.ndim = {inputs.ndim}")

    if size_average:
        return total / targets.size
    return total


def _reference_focal_loss(inputs, targets, *, alpha=1.0, gamma=0.0,
                          size_average=True, ignore_index=255):
    """Pure-JAX reference mirroring the PyTorch module."""
    logp = jax.nn.log_softmax(inputs.astype(jnp.float32), axis=1)
    valid = targets != ignore_index
    t_safe = jnp.where(valid, targets, 0).astype(jnp.int32)
    logp_t = jnp.take_along_axis(logp, t_safe[:, None], axis=1)
    logp_t = jnp.squeeze(logp_t, axis=1)
    ce = jnp.where(valid, -logp_t, 0.0)
    pt = jnp.exp(-ce)
    fl = alpha * (1.0 - pt) ** gamma * ce
    return fl.mean() if size_average else fl.sum()


if __name__ == "__main__":
    key = jax.random.PRNGKey(0)
    k1, k2, k3, k4, k5 = jax.random.split(key, 5)

    # Segmentation-shaped case: (N, C, H, W) logits, (N, H, W) targets.
    n, c, h, w = 2, 4, 16, 16
    inputs = jax.random.normal(k1, (n, c, h, w), dtype=jnp.float32)
    targets = jax.random.randint(k2, (n, h, w), 0, c, dtype=jnp.int32)
    ignore_mask = jax.random.uniform(k3, (n, h, w)) < 0.1
    targets = jnp.where(ignore_mask, 255, targets)

    # Default module params: alpha=1, gamma=0, size_average=True.
    out = jax.block_until_ready(focal_loss(inputs, targets))
    ref = _reference_focal_loss(inputs, targets)
    assert out.shape == (), out.shape
    assert jnp.allclose(out, ref, atol=1e-4, rtol=1e-4), (out, ref)

    # Non-default params: alpha=0.25, gamma=2, sum reduction.
    out2 = jax.block_until_ready(
        focal_loss(inputs, targets, alpha=0.25, gamma=2.0, size_average=False))
    ref2 = _reference_focal_loss(inputs, targets, alpha=0.25, gamma=2.0,
                                 size_average=False)
    assert jnp.allclose(out2, ref2, atol=1e-4, rtol=1e-4), (out2, ref2)

    # Classification-shaped case: (N, C) logits, (N,) targets (no transpose pass).
    n2, c2 = 16, 10
    x2 = jax.random.normal(k4, (n2, c2), dtype=jnp.float32)
    t2 = jax.random.randint(k5, (n2,), 0, c2, dtype=jnp.int32)
    out3 = jax.block_until_ready(focal_loss(x2, t2, gamma=2.0))
    ref3 = _reference_focal_loss(x2, t2, gamma=2.0)
    assert jnp.allclose(out3, ref3, atol=1e-4, rtol=1e-4), (out3, ref3)

    print("KERNEL_OK")
</pallas_src>

<mosaic_0001>
module attributes {stable_mosaic.version = 11 : i64} {
  func.func @_focal_loss_nchw_kernel(%arg0: i32, %arg1: i32, %arg2: memref<1x4x8x32xf32, #tpu.memory_space<vmem>>, %arg3: memref<1x1x8x32xi32, #tpu.memory_space<vmem>>, %arg4: memref<1x1x8x1xf32, #tpu.memory_space<vmem>>) attributes {dimension_semantics = [#tpu.dimension_semantics<parallel>, #tpu.dimension_semantics<parallel>], iteration_bounds = array<i64: 2, 1>, scalar_prefetch = 0 : i64, scratch_operands = 0 : i64, tpu.core_type = #tpu.core_type<tc>, window_params = [{transform_indices = @transform_0, window_bounds = array<i64: 1, 4, 8, 32>}, {transform_indices = @transform_1, window_bounds = array<i64: 1, 1, 8, 32>}, {transform_indices = @transform_2, window_bounds = array<i64: 1, 1, 8, 1>}]} {
    %c0 = arith.constant 0 : index
    %c0_0 = arith.constant 0 : index
    %c0_1 = arith.constant 0 : index
    %c0_2 = arith.constant 0 : index
    %0 = vector.load %arg2[%c0, %c0_0, %c0_1, %c0_2] : memref<1x4x8x32xf32, #tpu.memory_space<vmem>>, vector<1x4x8x32xf32>
    %1 = vector.shape_cast %0 : vector<1x4x8x32xf32> to vector<4x8x32xf32>
    %c0_3 = arith.constant 0 : index
    %c0_4 = arith.constant 0 : index
    %c0_5 = arith.constant 0 : index
    %c0_6 = arith.constant 0 : index
    %2 = vector.load %arg3[%c0_3, %c0_4, %c0_5, %c0_6] : memref<1x1x8x32xi32, #tpu.memory_space<vmem>>, vector<1x1x8x32xi32>
    %3 = vector.shape_cast %2 : vector<1x1x8x32xi32> to vector<8x32xi32>
    %cst = arith.constant dense<0xFF800000> : vector<8x32xf32>
    %4 = vector.multi_reduction <maximumf>, %1, %cst [0] : vector<4x8x32xf32> to vector<8x32xf32>
    %5 = vector.shape_cast %4 : vector<8x32xf32> to vector<1x8x32xf32>
    %6 = vector.broadcast %5 : vector<1x8x32xf32> to vector<4x8x32xf32>
    %7 = arith.subf %1, %6 : vector<4x8x32xf32>
    %8 = math.exp %7 : vector<4x8x32xf32>
    %cst_7 = arith.constant dense<0.000000e+00> : vector<8x32xf32>
    %9 = vector.multi_reduction <add>, %8, %cst_7 [0] : vector<4x8x32xf32> to vector<8x32xf32>
    %cst_8 = arith.constant 0.000000e+00 : f32
    %10 = vector.broadcast %cst_8 : f32 to vector<8x32xf32>
    %c0_i32 = arith.constant 0 : i32
    %11 = vector.broadcast %c0_i32 : i32 to vector<8x32xi32>
    %12 = arith.cmpi eq, %3, %11 : vector<8x32xi32>
    %13 = vector.extract_strided_slice %1 {offsets = [0, 0, 0], sizes = [1, 8, 32], strides = [1, 1, 1]} : vector<4x8x32xf32> to vector<1x8x32xf32>
    %14 = vector.shape_cast %13 : vector<1x8x32xf32> to vector<8x32xf32>
    %15 = arith.select %12, %14, %10 : vector<8x32xi1>, vector<8x32xf32>
    %c1_i32 = arith.constant 1 : i32
    %16 = vector.broadcast %c1_i32 : i32 to vector<8x32xi32>
    %17 = arith.cmpi eq, %3, %16 : vector<8x32xi32>
    %18 = vector.extract_strided_slice %1 {offsets = [1, 0, 0], sizes = [1, 8, 32], strides = [1, 1, 1]} : vector<4x8x32xf32> to vector<1x8x32xf32>
    %19 = vector.shape_cast %18 : vector<1x8x32xf32> to vector<8x32xf32>
    %20 = arith.select %17, %19, %15 : vector<8x32xi1>, vector<8x32xf32>
    %c2_i32 = arith.constant 2 : i32
    %21 = vector.broadcast %c2_i32 : i32 to vector<8x32xi32>
    %22 = arith.cmpi eq, %3, %21 : vector<8x32xi32>
    %23 = vector.extract_strided_slice %1 {offsets = [2, 0, 0], sizes = [1, 8, 32], strides = [1, 1, 1]} : vector<4x8x32xf32> to vector<1x8x32xf32>
    %24 = vector.shape_cast %23 : vector<1x8x32xf32> to vector<8x32xf32>
    %25 = arith.select %22, %24, %20 : vector<8x32xi1>, vector<8x32xf32>
    %c3_i32 = arith.constant 3 : i32
    %26 = vector.broadcast %c3_i32 : i32 to vector<8x32xi32>
    %27 = arith.cmpi eq, %3, %26 : vector<8x32xi32>
    %28 = vector.extract_strided_slice %1 {offsets = [3, 0, 0], sizes = [1, 8, 32], strides = [1, 1, 1]} : vector<4x8x32xf32> to vector<1x8x32xf32>
    %29 = vector.shape_cast %28 : vector<1x8x32xf32> to vector<8x32xf32>
    %30 = arith.select %27, %29, %25 : vector<8x32xi1>, vector<8x32xf32>
    %31 = math.log %9 : vector<8x32xf32>
    %32 = arith.subf %4, %30 : vector<8x32xf32>
    %33 = arith.addf %31, %32 : vector<8x32xf32>
    %cst_9 = arith.constant 1.000000e+00 : f32
    %34 = vector.broadcast %cst_9 : f32 to vector<8x32xf32>
    %35 = arith.mulf %34, %33 : vector<8x32xf32>
    %36 = tpu.iota {dimensions = array<i32: 1>} : vector<8x32xi32>
    %c32_i32 = arith.constant 32 : i32
    %37 = arith.muli %arg1, %c32_i32 : i32
    %38 = vector.broadcast %37 : i32 to vector<8x32xi32>
    %39 = arith.addi %36, %38 : vector<8x32xi32>
    %c255_i32 = arith.constant 255 : i32
    %40 = vector.broadcast %c255_i32 : i32 to vector<8x32xi32>
    %41 = arith.cmpi ne, %3, %40 : vector<8x32xi32>
    %c32_i32_10 = arith.constant 32 : i32
    %42 = vector.broadcast %c32_i32_10 : i32 to vector<8x32xi32>
    %43 = arith.cmpi slt, %39, %42 : vector<8x32xi32>
    %44 = arith.andi %41, %43 : vector<8x32xi1>
    %cst_11 = arith.constant 0.000000e+00 : f32
    %45 = vector.broadcast %cst_11 : f32 to vector<8x32xf32>
    %46 = arith.select %44, %35, %45 : vector<8x32xi1>, vector<8x32xf32>
    %cst_12 = arith.constant dense<0.000000e+00> : vector<8xf32>
    %47 = vector.multi_reduction <add>, %46, %cst_12 [1] : vector<8x32xf32> to vector<8xf32>
    %48 = vector.shape_cast %47 : vector<8xf32> to vector<8x1xf32>
    %c0_13 = arith.constant 0 : index
    %c0_14 = arith.constant 0 : index
    %c0_15 = arith.constant 0 : index
    %c0_16 = arith.constant 0 : index
    %49 = vector.load %arg4[%c0_13, %c0_14, %c0_15, %c0_16] : memref<1x1x8x1xf32, #tpu.memory_space<vmem>>, vector<1x1x8x1xf32>
    %50 = vector.shape_cast %49 : vector<1x1x8x1xf32> to vector<8x1xf32>
    %51 = vector.shape_cast %48 : vector<8x1xf32> to vector<1x1x8x1xf32>
    tpu.vector_store %arg4[%c0_13, %c0_14, %c0_15, %c0_16], %51 {strides = array<i32>} : memref<1x1x8x1xf32, #tpu.memory_space<vmem>>, vector<1x1x8x1xf32>,
    return
  }
  func.func @transform_0(%arg0: i32, %arg1: i32) -> (i32, i32, i32, i32) {
    %c0_i32 = arith.constant 0 : i32
    %c0_i32_0 = arith.constant 0 : i32
    %c0_i32_1 = arith.constant 0 : i32
    return %arg0, %c0_i32, %c0_i32_0, %arg1 : i32, i32, i32, i32
  }
  func.func @transform_1(%arg0: i32, %arg1: i32) -> (i32, i32, i32, i32) {
    %c0_i32 = arith.constant 0 : i32
    %c0_i32_0 = arith.constant 0 : i32
    %c0_i32_1 = arith.constant 0 : i32
    return %arg0, %c0_i32, %c0_i32_0, %arg1 : i32, i32, i32, i32
  }
  func.func @transform_2(%arg0: i32, %arg1: i32) -> (i32, i32, i32, i32) {
    %c0_i32 = arith.constant 0 : i32
    %c0_i32_0 = arith.constant 0 : i32
    %c0_i32_1 = arith.constant 0 : i32
    return %arg0, %arg1, %c0_i32, %c0_i32_0 : i32, i32, i32, i32
  }
}

</mosaic_0001>

<bundles_post_ra>
// kernel: tpu_custom_call.1
= control target key start
LH: loop header
LB: loop body
LE: loop exit
PB: predicated region body
PF: predicated region fallthrough
CT: control target
= control target key end

     0   :  { %7 = vsyncpa [#allocation3], 0  ;;  %s788_s0 = inlined_call_operand.hbm [shape: f32[2,4,8,32], index: 0, kind: input, shape index: {}]   ;;  %s789_s1 = inlined_call_operand.hbm [shape: s32[2,1,8,32], index: 1, kind: input, shape index: {}]   ;;  %s790_s2 = inlined_call_operand.vmem [shape: f32[2,1,8,1], index: 2, kind: output, shape index: {}]  }
   0x1   :  { %9 = vsyncpa [#allocation3 + $0x1], 0 }
   0x2   :  { %10 = vsyncpa [#allocation5], 0 }
   0x3   :  { %12 = vsyncpa [#allocation5 + $0x1], 0  ;;  %s615_s9 = smov 0   ;;  %s617_s10 = smov 0  }
   0x4   :  { %s619_s11 = smov 0   ;;  %s621_s12 = smov 0  }
   0x5   :  { %s623_s13 = smov 0   ;;  %s625_s14 = smov 0  }
   0x6 LB: > { %s392_s15 = sadd.s32 4294967295, %s594_s14   ;;  %s30_s16 = sadd.s32 1, %s590_s13  ;;  %s594_s14 = sphi %s625_s14, %s18_s14   ;;  %s590_s13 = sphi %s623_s13, %s802_s13   ;;  %s586_s12 = sphi %s621_s12, %s801_s12   ;;  %s582_s11 = sphi %s619_s11, %s800_s11   ;;  %s578_s10 = sphi %s617_s10, %s799_s10   ;;  %s574_s9 = sphi %s615_s9, %s798_s9  }
   0x7   : > { %p32_p0 = scmp.ge.s32.totalorder %s30_s16, 2  ;;  %s39_s17 = sadd.s32 1, %s582_s11 }
   0x8   : > { %p46_p1 = scmp.ne.s32.totalorder %s582_s11, %s578_s10  ;;  %p47_p2 = scmp.eq.s32.totalorder %s594_s14, 0 }
   0x9   : > { %s804_s16 = smov (%p32_p0, %s30_s16), 0  ;;  %p52_p4 = scmp.ne.s32.totalorder %s578_s10, %s574_s9 }
   0xa   : > { %p651_p3 = por %p47_p2, %p46_p1  ;;  %s34_s19 = ssub.s32 %s590_s13, %s804_s16 }
   0xb   : > { %p53_p5 = scmp.eq.s32.totalorder %s392_s15, 0  ;;  %p37_p6 = scmp.eq.s32.totalorder %s34_s19, 0 }
   0xc   : > { %p419_p8 = scmp.lt.s32.totalorder %s594_s14, 2  ;;  %s667_s22 = sand.u32 1, %s582_s11  }
   0xd   : > { %p658_p7 = por %p53_p5, %p52_p4  ;;  %s407_s23 = sshll.u32 %s590_s13, 9 }
   0xe   : > { %s664_s21 = scalar_select %p37_p6, %s582_s11, %s39_s17  }
   0xf   : > { %s793_s20 = scalar_select %p658_p7, 1, 0 }
  0x10   : > { %s396_s24 = sshll.u32 %s667_s22, 5  ;;  %s674_s27 = scalar_lea.hbm %s788_s0, %s407_s23 }
  0x11   : > { %s136_s28 = scalar_lea.vmem [#allocation2], %s396_s24  ;;  %p678_p9 = pnand %p419_p8, %p651_p3 }
  0x12   : > { %s144_s29 = sshll.u32 %s136_s28, 4  ;;  %s133_s3 = scalar_lea.sflag [#allocation3], %s667_s22  ;;  %s682_s29 = int_to_ptr.vmem [resolvable:$true] %s144_s29 }
  0x13   : > { %s480_s4 = scalar_lea.hbm %s674_s27, 512  ;;  %p482_p11 = pneg %p678_p9 }
  0x14   : > { %p481_p10 = scmp.ne.s32.totalorder %s674_s27, %s480_s4  ;;  %s485_s7 = scalar_lea.hbm %s788_s0, 1024 }
  0x15   : > { %p486_p0 = scmp.lt.u32.totalorder %s674_s27, %s788_s0  ;;  %p487_p1 = scmp.lt.u32.totalorder %s485_s7, %s480_s4 }
  0x16   : > { %p483_p12 = pnand %p482_p11, %p481_p10  ;;  %p489_p3 = scmp.lt.u32.totalorder %s480_s4, %s674_s27 }
  0x17   : > { %p488_p2 = por %p487_p1, %p486_p0 }
  0x18   : > { %p484_p13 = pneg %p483_p12 }
  0x19   : > { %p490_p4 = por %p489_p3, %p488_p2 }
  0x1b   : > { %p491_p5 = pnand %p490_p4, %p484_p13 }
  0x1d   : > { %494 = shalt.err (!%p491_p5)
}
  0x1e   : > { %s495_s15 = scalar_lea.vmem %s682_s29, 512  ;;  %s596_s17 = smov [#allocation2]  }
  0x1f   : > { %p496_p6 = scmp.ne.s32.totalorder %s682_s29, %s495_s15  ;;  %s500_s18 = sshll.u32 %s596_s17, 4  ;;  %s501_s18 = int_to_ptr.vmem [resolvable:$false] %s500_s18 }
  0x20   : > { %s502_s19 = scalar_lea.vmem %s501_s18, 1024  ;;  %p503_p12 = scmp.lt.s32.totalorder %s682_s29, %s501_s18 }
  0x21   : > { %p498_p8 = pnand %p496_p6, %p482_p11  ;;  %p504_p0 = scmp.lt.s32.totalorder %s502_s19, %s495_s15 }
  0x23   : > { %p499_p10 = pneg %p498_p8  ;;  %p505_p1 = por %p504_p0, %p503_p12 }
  0x25   : > { %p506_p2 = pnand %p505_p1, %p499_p10 }
  0x27   : > { %509 = shalt.err (!%p506_p2)
}
  0x28   : > { %s597_s23 = smov 128   ;;  %s598_s24 = smov 8  }
  0x29   : > { %415 = dma.hbm_to_vmem [thread:$0]  (!%p678_p9), %s674_s27, 512, %s682_s29, %s133_s3, %s597_s23, %s597_s23, %s598_s24  }
  0x2a   : > { %p401_p13 = scmp.ge.s32.totalorder %s594_s14, 1  ;;  %p171_p3 = scmp.lt.s32.totalorder %s594_s14, 3 }
  0x2b   : > { %s399_s25 = sshll.u32 %s667_s22, 3  ;;  %s400_s28 = sshll.u32 %s590_s13, 7 }
  0x2c   : > { %p715_p4 = pnand %p401_p13, %p171_p3  ;;  %s158_s4 = scalar_lea.vmem [#allocation4], %s399_s25 }
  0x2d   : > { %s166_s5 = sshll.u32 %s158_s4, 4  ;;  %s723_s8 = scalar_lea.hbm %s789_s1, %s400_s28  ;;  %s167_s5 = int_to_ptr.vmem [resolvable:$true] %s166_s5 }
  0x2e   : > { %s795_s26 = scalar_select %p715_p4, 1, 0 }
  0x2f   : > { %s155_s27 = scalar_lea.sflag [#allocation5], %s667_s22  ;;  %s510_s29 = scalar_lea.hbm %s723_s8, 128 }
  0x30   : > { %p511_p5 = scmp.ne.s32.totalorder %s723_s8, %s510_s29  ;;  %s515_s15 = scalar_lea.hbm %s789_s1, 256 }
  0x31   : > { %p516_p10 = scmp.lt.u32.totalorder %s723_s8, %s789_s1  ;;  %p517_p12 = scmp.lt.u32.totalorder %s515_s15, %s510_s29 }
  0x32   : > { %p513_p6 = pnand %p511_p5, %p482_p11  ;;  %p519_p1 = scmp.lt.u32.totalorder %s510_s29, %s723_s8 }
  0x33   : > { %p518_p0 = por %p517_p12, %p516_p10 }
  0x34   : > { %p514_p8 = pneg %p513_p6 }
  0x35   : > { %p520_p2 = por %p519_p1, %p518_p0 }
  0x37   : > { %p521_p13 = pnand %p520_p2, %p514_p8 }
  0x39   : > { %524 = shalt.err (!%p521_p13)
}
  0x3a   : > { %s525_s22 = scalar_lea.vmem %s167_s5, 128  ;;  %s599_s19 = smov [#allocation4]  }
  0x3b   : > { %p526_p3 = scmp.ne.s32.totalorder %s167_s5, %s525_s22  ;;  %s530_s23 = sshll.u32 %s599_s19, 4  ;;  %s531_s23 = int_to_ptr.vmem [resolvable:$false] %s530_s23 }
  0x3c   : > { %s532_s24 = scalar_lea.vmem %s531_s23, 256  ;;  %p533_p7 = scmp.lt.s32.totalorder %s167_s5, %s531_s23 }
  0x3d   : > { %p528_p5 = pnand %p526_p3, %p482_p11  ;;  %p534_p4 = scmp.lt.s32.totalorder %s532_s24, %s525_s22 }
  0x3f   : > { %p529_p6 = pneg %p528_p5  ;;  %p535_p10 = por %p534_p4, %p533_p7 }
  0x41   : > { %p536_p12 = pnand %p535_p10, %p529_p6 }
  0x43   : > { %539 = shalt.err (!%p536_p12)
}
  0x44   : > { %418 = dma.hbm_to_vmem [thread:$0]  (!%p678_p9), %s723_s8, 128, %s167_s5, %s155_s27  }
  0x45   : > { %p796_p8 = scmp.ne.s32.totalorder %s795_s26, 0 }
  0x46   : > { %s177_s25 = sand.u32 (!%p796_p8), 1, %s578_s10   ;;  %p797_p11 = scmp.ne.s32.totalorder (!%p796_p8), %s793_s20, 0 }
  0x47   : > { %175 = sbr.rel (%p796_p8) target bundleno = 272 (0x110), region = 28  ;;  %s402_s28 = sshll.u32 (!%p796_p8), %s177_s25, 5 }
  0x48   : > { %s178_s4 = scalar_lea.sflag (!%p796_p8), [#allocation3], %s177_s25  ;;  %s181_s6 = scalar_lea.vmem (!%p796_p8), [#allocation2], %s402_s28 }
  0x4e   : > { %565 = dma.done.wait (%p797_p11), %s178_s4, 512  }
  0x4f   : > { %567 = vsyncadd (%p797_p11), %s178_s4, 4294966784  ;;  %s403_s7 = sshll.u32 %s177_s25, 3  ;;  %s187_s29 = scalar_lea.sflag [#allocation5], %s177_s25 }
  0x50   : > { %s190_s30 = scalar_lea.vmem [#allocation4], %s403_s7 }
  0x51   : > { %569 = dma.done.wait (%p797_p11), %s187_s29, 128  }
  0x52   : > { %571 = vsyncadd (%p797_p11), %s187_s29, 4294967168  ;;  %vm230_vm0 = vcmask 261120   ;;  %v225_v0 = vld [vmem:[%s181_s6] sm:$0xff]  ;;  %v226_v1 = vld [vmem:[%s181_s6 + $0x8] sm:$0xff]  ;;  %v269_v33 = vlaneseq  ;;  %p218_p7 = scmp.lt.s32.totalorder %s586_s12, 1  ;;  %vm281_vm8 = vcmask 7168  }
  0x53   : > { %v227_v2 = vld [vmem:[%s181_s6 + $0x10] sm:$0xff]  ;;  %v228_v3 = vld [vmem:[%s181_s6 + $0x18] sm:$0xff]  ;;  %v231_v4 = vsel %vm230_vm0, %v225_v0, -inf  ;;  %v232_v5 = vsel %vm230_vm0, %v226_v1, -inf  ;;  %v229_v20 = vld [vmem:[%s190_s30] sm:$0xff] }
  0x54   : > { %v233_v6 = vsel %vm230_vm0, %v227_v2, -inf  ;;  %v234_v7 = vsel %vm230_vm0, %v228_v3, -inf  ;;  %v235_v8 = vmax.f32 %v231_v4, %v232_v5  ;;  %vm257_vm1 = vcmp.eq.s32.totalorder %v229_v20, 0  ;;  %s806_s12 = smov (!%p218_p7, %s586_s12), 1 }
  0x55   : > { %v236_v9 = vmax.f32 %v233_v6, %v234_v7  ;;  %v258_v30 = vsel %vm257_vm1, %v225_v0, 0.0  ;;  %vm259_vm2 = vcmp.eq.s32.totalorder %v229_v20, 1  ;;  %vm261_vm3 = vcmp.eq.s32.totalorder %v229_v20, 2  ;;  %s404_s20 = sshll.u32 %s806_s12, 3 }
  0x56   : > { %v260_v32 = vsel %vm259_vm2, %v226_v1, %v258_v30  ;;  %vm263_vm4 = vcmp.eq.s32.totalorder %v229_v20, 3  ;;  %v270_v35 = vand.u32 127, %v269_v33  ;;  %vm274_vm5 = vcmp.ne.s32.totalorder %v229_v20, 255  ;;  %s224_s8 = scalar_lea.vmem %s790_s2, %s404_s20 }
  0x57   : > { %v237_v10 = vmax.f32 %v235_v8, %v236_v9  ;;  %v262_v34 = vsel %vm261_vm3, %v227_v2, %v260_v32 }
  0x58   : > { %v264_v36 = vsel %vm263_vm4, %v228_v3, %v262_v34  ;;  %vm275_vm6 = vcmp.lt.s32.totalorder %v270_v35, 32 }
  0x59   : > { %v238_v11 = vsub.f32 %v225_v0, %v237_v10  ;;  %v239_v12 = vsub.f32 %v226_v1, %v237_v10  ;;  %v240_v13 = vsub.f32 %v227_v2, %v237_v10  ;;  %v241_v14 = vsub.f32 %v228_v3, %v237_v10  ;;  %vm276_vm7 = vmand %vm274_vm5, %vm275_vm6 }
  0x5a   : > { %v267_v37 = vsub.f32 %v237_v10, %v264_v36 }
  0x5b   : > { %v242_v15 = vmul.f32 1.442695, %v238_v11  ;;  %v244_v16 = vmul.f32 1.442695, %v239_v12  ;;  %v246_v17 = vmul.f32 1.442695, %v240_v13 }
  0x5c   : > { %v248_v18 = vmul.f32 1.442695, %v241_v14 }
  0x5d   : > { %470 = vpow2.f32 %v242_v15 }
  0x5e   : > { %472 = vpow2.f32 %v244_v16 }
  0x5f   : > { %474 = vpow2.f32 %v246_v17 }
  0x60   : > { %476 = vpow2.f32 %v248_v18 }
  0x67   : > { %v471_v19 = vpop.eup %470 }
  0x68   : > { %v473_v21 = vpop.eup %472  ;;  %v250_v22 = vsel %vm230_vm0, %v471_v19, 0.0 }
  0x69   : > { %v475_v23 = vpop.eup %474  ;;  %v251_v24 = vsel %vm230_vm0, %v473_v21, 0.0 }
  0x6a   : > { %v477_v25 = vpop.eup %476  ;;  %v252_v26 = vadd.f32 %v251_v24, %v250_v22  ;;  %v253_v27 = vsel %vm230_vm0, %v475_v23, 0.0 }
  0x6b   : > { %v255_v28 = vsel %vm230_vm0, %v477_v25, 0.0 }
  0x6c   : > { %v254_v29 = vadd.f32 %v253_v27, %v252_v26 }
  0x6e   : > { %v256_v31 = vadd.f32 %v255_v28, %v254_v29 }
  0x70   : > { %478 = vlog2.f32 %v256_v31 }
  0x7a   : > { %v479_v38 = vpop.eup %478 }
  0x7b   : > { %v266_v39 = vmul.f32 0.6931472, %v479_v38 }
  0x7d   : > { %v268_v40 = vadd.f32 %v267_v37, %v266_v39 }
  0x7f   : > { %v277_v41 = vsel %vm276_vm7, %v268_v40, 0.0 }
  0x80   : > { %v278_v42 = vsel %vm230_vm0, %v277_v41, 0.0 }
  0x81   : > { %279 = vadd.xlane.f32.xlu0 %v278_v42 }
 0x10e   : > { %v280_v43 = vpop.xlane.xlu0 %279 }
 0x10f   : > { %282 = vst.msk [vmem:[%s224_s8] sm:$0xff] %vm281_vm8, %v280_v43 }
 0x110 PF: > { %s18_s14 = sadd.s32 1, %s594_s14   ;;  %s798_s9 = smov %s578_s10 }
 0x111   : > { %p15_p9 = scmp.ge.s32.totalorder %s18_s14, 4   ;;  %s799_s10 = smov %s582_s11 }
 0x112   : > { %s800_s11 = smov %s664_s21  ;;  %s801_s12 = smov %s590_s13 }
 0x113   : > { %s802_s13 = smov %s804_s16  ;;  %17 = sbr.rel (!%p15_p9) target bundleno = 6 (0x6), region = 81 }
 0x11a   :  { %308 = vsyncpa [#allocation3], 1 }
 0x11b   :  { %310 = vsyncpa [#allocation3 + $0x1], 1 }
 0x11c   :  { %311 = vsyncpa [#allocation5], 1 }
 0x11d   :  { %313 = vsyncpa [#allocation5 + $0x1], 1 }

</bundles_post_ra>
